<compile_context>
chip_gen: v7x
topology: tpu7x:2x2x1
jax: 0.10.0
libtpu: 0.0.40
codegen_flags: <defaults>
</compile_context>

<pallas_src>
import functools

import jax
import jax.numpy as jnp
from jax.experimental import pallas as pl
from jax.experimental.pallas import tpu as pltpu


def _round_up(x: int, m: int) -> int:
    return (x + m - 1) // m * m


def _mlp_kernel(x_ref, w1_ref, b1_ref, w2_ref, b2_ref, o_ref, *, mxu_dtype):
    # Layer 1: (TB, Dp) @ (Dp, Hp) on the MXU with f32 accumulation.
    x = x_ref[...].astype(mxu_dtype)
    w1 = w1_ref[...].astype(mxu_dtype)
    h = jnp.dot(x, w1, preferred_element_type=jnp.float32)
    h = h + b1_ref[...]                      # (TB, Hp) + (1, Hp), f32 VPU
    h = jnp.maximum(h, 0.0)                  # ReLU in f32

    # Layer 2: (TB, Hp) @ (Hp, Op) on the MXU with f32 accumulation.
    w2 = w2_ref[...].astype(mxu_dtype)
    y = jnp.dot(h.astype(mxu_dtype), w2, preferred_element_type=jnp.float32)
    y = y + b2_ref[...]                      # (TB, Op) + (1, Op), f32 VPU
    o_ref[...] = y.astype(o_ref.dtype)


@functools.partial(jax.jit, static_argnames=("block_batch", "mxu_dtype"))
def simple_nn_forward(x, w1, b1, w2, b2, *, block_batch=512,
                      mxu_dtype=jnp.bfloat16):
    """Fused Linear -> ReLU -> Linear.

    x: (B, D_in); w1: (D_in, H); b1: (1, H) or (H,); w2: (H, O); b2: (1, O) or (O,).
    Weights are (in_dim, out_dim), i.e. transposed vs. PyTorch's nn.Linear.
    """
    B, D = x.shape
    H = w1.shape[1]
    O = w2.shape[1]
    out_dtype = x.dtype

    b1 = b1.reshape(1, H)
    b2 = b2.reshape(1, O)

    # Lane-dense / sublane-aligned padding.  Exact: padded weight rows/cols
    # and bias lanes are zero, so padded lanes carry zeros end-to-end and the
    # real lanes are untouched.
    Dp = _round_up(D, 128)
    Hp = _round_up(H, 128)
    Op = _round_up(O, 128)
    TB = min(_round_up(B, 8), block_batch)   # batch tile (sublane-aligned)
    Bp = _round_up(B, TB)

    x_p = jnp.pad(x, ((0, Bp - B), (0, Dp - D)))
    w1_p = jnp.pad(w1, ((0, Dp - D), (0, Hp - H)))
    b1_p = jnp.pad(b1, ((0, 0), (0, Hp - H))).astype(jnp.float32)
    w2_p = jnp.pad(w2, ((0, Hp - H), (0, Op - O)))
    b2_p = jnp.pad(b2, ((0, 0), (0, Op - O))).astype(jnp.float32)

    grid = (Bp // TB,)

    flops = 2 * B * (D * H + H * O)
    bytes_accessed = (x_p.size * x_p.dtype.itemsize
                      + w1_p.size * w1_p.dtype.itemsize
                      + w2_p.size * w2_p.dtype.itemsize
                      + b1_p.size * 4 + b2_p.size * 4
                      + Bp * Op * jnp.dtype(out_dtype).itemsize)

    out_p = pl.pallas_call(
        functools.partial(_mlp_kernel, mxu_dtype=mxu_dtype),
        out_shape=jax.ShapeDtypeStruct((Bp, Op), out_dtype),
        grid=grid,
        in_specs=[
            pl.BlockSpec((TB, Dp), lambda i: (i, 0)),   # x: batch-tiled
            pl.BlockSpec((Dp, Hp), lambda i: (0, 0)),   # W1: resident in VMEM
            pl.BlockSpec((1, Hp), lambda i: (0, 0)),    # b1: resident
            pl.BlockSpec((Hp, Op), lambda i: (0, 0)),   # W2: resident
            pl.BlockSpec((1, Op), lambda i: (0, 0)),    # b2: resident
        ],
        out_specs=pl.BlockSpec((TB, Op), lambda i: (i, 0)),
        compiler_params=pltpu.CompilerParams(
            dimension_semantics=("parallel",)),
        cost_estimate=pl.CostEstimate(
            flops=flops, transcendentals=0, bytes_accessed=bytes_accessed),
    )(x_p, w1_p, b1_p, w2_p, b2_p)

    return out_p[:B, :O]


def init_params(key, input_dim, hidden_dim, output_dim, dtype=jnp.float32):
    """Deterministic init matching nn.Linear's U(-1/sqrt(fan_in), 1/sqrt(fan_in))."""
    k1, k2, k3, k4 = jax.random.split(key, 4)
    bound1 = 1.0 / (input_dim ** 0.5)
    bound2 = 1.0 / (hidden_dim ** 0.5)
    w1 = jax.random.uniform(k1, (input_dim, hidden_dim), dtype, -bound1, bound1)
    b1 = jax.random.uniform(k2, (1, hidden_dim), dtype, -bound1, bound1)
    w2 = jax.random.uniform(k3, (hidden_dim, output_dim), dtype, -bound2, bound2)
    b2 = jax.random.uniform(k4, (1, output_dim), dtype, -bound2, bound2)
    return w1, b1, w2, b2


if __name__ == "__main__":
    key = jax.random.PRNGKey(0)
    k_x, k_p = jax.random.split(key)

    batch, input_dim, hidden_dim, output_dim = 8, 32, 64, 16
    x = jax.random.normal(k_x, (batch, input_dim), jnp.float32)
    w1, b1, w2, b2 = init_params(k_p, input_dim, hidden_dim, output_dim)

    out = simple_nn_forward(x, w1, b1, w2, b2)
    out = jax.block_until_ready(out)
    assert out.shape == (batch, output_dim)

    # Reference 1: same mixed precision as the kernel (bf16 operands, f32 acc).
    xb, w1b, w2b = (t.astype(jnp.bfloat16) for t in (x, w1, w2))
    h_ref = jnp.maximum(
        jnp.dot(xb, w1b, preferred_element_type=jnp.float32) + b1, 0.0)
    ref_mixed = jnp.dot(h_ref.astype(jnp.bfloat16), w2b,
                        preferred_element_type=jnp.float32) + b2
    assert jnp.allclose(out, ref_mixed, atol=1e-4, rtol=1e-4)

    # Reference 2: full-f32 math (loose tolerance: bf16 operand rounding only).
    ref_f32 = jnp.maximum(x @ w1 + b1, 0.0) @ w2 + b2
    assert jnp.allclose(out, ref_f32, atol=5e-2, rtol=5e-2)

    print("KERNEL_OK")
</pallas_src>

<mosaic_0001>
module attributes {stable_mosaic.version = 11 : i64} {
  func.func @_mlp_kernel(%arg0: i32, %arg1: memref<8x128xf32, #tpu.memory_space<vmem>>, %arg2: memref<128x128xf32, #tpu.memory_space<vmem>>, %arg3: memref<1x128xf32, #tpu.memory_space<vmem>>, %arg4: memref<128x128xf32, #tpu.memory_space<vmem>>, %arg5: memref<1x128xf32, #tpu.memory_space<vmem>>, %arg6: memref<8x128xf32, #tpu.memory_space<vmem>>) attributes {dimension_semantics = [#tpu.dimension_semantics<parallel>], iteration_bounds = array<i64: 1>, scalar_prefetch = 0 : i64, scratch_operands = 0 : i64, tpu.core_type = #tpu.core_type<tc>, window_params = [{transform_indices = @transform_0, window_bounds = array<i64: 8, 128>}, {pipeline_mode = #tpu.pipeline_mode<synchronous>, transform_indices = @transform_1, window_bounds = array<i64: 128, 128>}, {pipeline_mode = #tpu.pipeline_mode<synchronous>, transform_indices = @transform_2, window_bounds = array<i64: 1, 128>}, {pipeline_mode = #tpu.pipeline_mode<synchronous>, transform_indices = @transform_3, window_bounds = array<i64: 128, 128>}, {pipeline_mode = #tpu.pipeline_mode<synchronous>, transform_indices = @transform_4, window_bounds = array<i64: 1, 128>}, {transform_indices = @transform_5, window_bounds = array<i64: 8, 128>}]} {
    %c0 = arith.constant 0 : index
    %c0_0 = arith.constant 0 : index
    %0 = vector.load %arg1[%c0, %c0_0] : memref<8x128xf32, #tpu.memory_space<vmem>>, vector<8x128xf32>
    %1 = arith.truncf %0 : vector<8x128xf32> to vector<8x128xbf16>
    %c0_1 = arith.constant 0 : index
    %c0_2 = arith.constant 0 : index
    %2 = vector.load %arg2[%c0_1, %c0_2] : memref<128x128xf32, #tpu.memory_space<vmem>>, vector<128x128xf32>
    %3 = arith.truncf %2 : vector<128x128xf32> to vector<128x128xbf16>
    %cst = arith.constant dense<0.000000e+00> : vector<8x128xf32>
    %4 = tpu.matmul %1, %3, %cst {dimension_numbers = #tpu.dot_dimension_numbers<[1], [0], [0], [1], [0, 0, 1, 1], [], []>} : vector<8x128xbf16>, vector<128x128xbf16>, vector<8x128xf32> -> vector<8x128xf32>
    %c0_3 = arith.constant 0 : index
    %c0_4 = arith.constant 0 : index
    %5 = vector.load %arg3[%c0_3, %c0_4] : memref<1x128xf32, #tpu.memory_space<vmem>>, vector<1x128xf32>
    %6 = vector.broadcast %5 : vector<1x128xf32> to vector<8x128xf32>
    %7 = arith.addf %4, %6 : vector<8x128xf32>
    %cst_5 = arith.constant 0.000000e+00 : f32
    %8 = vector.broadcast %cst_5 : f32 to vector<8x128xf32>
    %9 = arith.maximumf %7, %8 : vector<8x128xf32>
    %c0_6 = arith.constant 0 : index
    %c0_7 = arith.constant 0 : index
    %10 = vector.load %arg4[%c0_6, %c0_7] : memref<128x128xf32, #tpu.memory_space<vmem>>, vector<128x128xf32>
    %11 = arith.truncf %10 : vector<128x128xf32> to vector<128x128xbf16>
    %12 = arith.truncf %9 : vector<8x128xf32> to vector<8x128xbf16>
    %cst_8 = arith.constant dense<0.000000e+00> : vector<8x128xf32>
    %13 = tpu.matmul %12, %11, %cst_8 {dimension_numbers = #tpu.dot_dimension_numbers<[1], [0], [0], [1], [0, 0, 1, 1], [], []>} : vector<8x128xbf16>, vector<128x128xbf16>, vector<8x128xf32> -> vector<8x128xf32>
    %c0_9 = arith.constant 0 : index
    %c0_10 = arith.constant 0 : index
    %14 = vector.load %arg5[%c0_9, %c0_10] : memref<1x128xf32, #tpu.memory_space<vmem>>, vector<1x128xf32>
    %15 = vector.broadcast %14 : vector<1x128xf32> to vector<8x128xf32>
    %16 = arith.addf %13, %15 : vector<8x128xf32>
    %c0_11 = arith.constant 0 : index
    %c0_12 = arith.constant 0 : index
    %17 = vector.load %arg6[%c0_11, %c0_12] : memref<8x128xf32, #tpu.memory_space<vmem>>, vector<8x128xf32>
    tpu.vector_store %arg6[%c0_11, %c0_12], %16 {strides = array<i32>} : memref<8x128xf32, #tpu.memory_space<vmem>>, vector<8x128xf32>,
    return
  }
  func.func @transform_0(%arg0: i32) -> (i32, i32) {
    %c0_i32 = arith.constant 0 : i32
    %c0_i32_0 = arith.constant 0 : i32
    return %arg0, %c0_i32 : i32, i32
  }
  func.func @transform_1(%arg0: i32) -> (i32, i32) {
    %c0_i32 = arith.constant 0 : i32
    %c0_i32_0 = arith.constant 0 : i32
    %c0_i32_1 = arith.constant 0 : i32
    return %c0_i32, %c0_i32_0 : i32, i32
  }
  func.func @transform_2(%arg0: i32) -> (i32, i32) {
    %c0_i32 = arith.constant 0 : i32
    %c0_i32_0 = arith.constant 0 : i32
    %c0_i32_1 = arith.constant 0 : i32
    return %c0_i32, %c0_i32_0 : i32, i32
  }
  func.func @transform_3(%arg0: i32) -> (i32, i32) {
    %c0_i32 = arith.constant 0 : i32
    %c0_i32_0 = arith.constant 0 : i32
    %c0_i32_1 = arith.constant 0 : i32
    return %c0_i32, %c0_i32_0 : i32, i32
  }
  func.func @transform_4(%arg0: i32) -> (i32, i32) {
    %c0_i32 = arith.constant 0 : i32
    %c0_i32_0 = arith.constant 0 : i32
    %c0_i32_1 = arith.constant 0 : i32
    return %c0_i32, %c0_i32_0 : i32, i32
  }
  func.func @transform_5(%arg0: i32) -> (i32, i32) {
    %c0_i32 = arith.constant 0 : i32
    %c0_i32_0 = arith.constant 0 : i32
    return %arg0, %c0_i32 : i32, i32
  }
}

</mosaic_0001>

<bundles_post_ra>
// kernel: simple_nn_forward.1
= control target key start
LH: loop header
LB: loop body
LE: loop exit
PB: predicated region body
PF: predicated region fallthrough
CT: control target
= control target key end

     0   :  { %v270_v3 = vmov 0.0   ;;  %vm271_vm0 = vmmov 0   ;;  %s438_s0 = inlined_call_operand.vmem [shape: f32[8,128], index: 0, kind: input, shape index: {}]   ;;  %s439_s1 = inlined_call_operand.vmem [shape: f32[128,128], index: 1, kind: input, shape index: {}]   ;;  %s440_s2 = inlined_call_operand.vmem [shape: f32[1,128], index: 2, kind: input, shape index: {}]   ;;  %s441_s3 = inlined_call_operand.vmem [shape: f32[128,128], index: 3, kind: input, shape index: {}]   ;;  %s442_s4 = inlined_call_operand.vmem [shape: f32[1,128], index: 4, kind: input, shape index: {}]   ;;  %s443_s5 = inlined_call_operand.hbm [shape: f32[8,128], index: 5, kind: output, shape index: {}]  }
   0x1   :  { %v24_v0 = vld [vmem:[%s439_s1] sm:$0xff]  ;;  %v25_v1 = vld [vmem:[%s439_s1 + $0x8] sm:$0xff]  ;;  %v26_v2 = vld [vmem:[%s439_s1 + $0x10] sm:$0xff]  ;;  %203 = vmatprep.subr.bf16.mxu0 %v270_v3  ;;  %219 = vmatprep.mubr.msk.bf16.mxu0 %vm271_vm0, %v270_v3 }
   0x2   :  { %v40_v4 = vpack.c.bf16 %v25_v1, %v24_v0  ;;  %v27_v5 = vld [vmem:[%s439_s1 + $0x18] sm:$0xff]  ;;  %223 = vmatprep.subr.bf16.mxu1 %v270_v3  ;;  %239 = vmatprep.mubr.msk.bf16.mxu1 %vm271_vm0, %v270_v3  ;;  %v28_v7 = vld [vmem:[%s439_s1 + $0x20] sm:$0xff]  ;;  %v29_v8 = vld [vmem:[%s439_s1 + $0x28] sm:$0xff] }
   0x3   :  { %v41_v6 = vpack.c.bf16 %v27_v5, %v26_v2  ;;  %v96_v9 = vld [vmem:[%s441_s3] sm:$0xff]  ;;  %v97_v10 = vld [vmem:[%s441_s3 + $0x8] sm:$0xff]  ;;  %v98_v11 = vld [vmem:[%s441_s3 + $0x10] sm:$0xff]  ;;  %v42_v13 = vpack.c.bf16 %v29_v8, %v28_v7 }
   0x4   :  { %204 = vmatpush3.bf16.msra.mxu0 %v40_v4  ;;  %v99_v12 = vld [vmem:[%s441_s3 + $0x18] sm:$0xff]  ;;  %v112_v14 = vpack.c.bf16 %v97_v10, %v96_v9  ;;  %v30_v15 = vld [vmem:[%s439_s1 + $0x30] sm:$0xff]  ;;  %v100_v18 = vld [vmem:[%s441_s3 + $0x20] sm:$0xff] }
   0x5   :  { %205 = vmatprep.subr.bf16.mxu0 %v270_v3  ;;  %v31_v16 = vld [vmem:[%s439_s1 + $0x38] sm:$0xff]  ;;  %v113_v17 = vpack.c.bf16 %v99_v12, %v98_v11  ;;  %v101_v19 = vld [vmem:[%s441_s3 + $0x28] sm:$0xff] }
   0x6   :  { %224 = vmatpush3.bf16.msra.mxu1 %v112_v14 }
   0x7   :  { %225 = vmatprep.subr.bf16.mxu1 %v270_v3 }
   0x8   :  { %206 = vmatpush3.bf16.msra.mxu0 %v41_v6 }
   0x9   :  { %207 = vmatprep.subr.bf16.mxu0 %v270_v3 }
   0xa   :  { %10 = vsyncpa [#allocation3], 0  ;;  %v43_v20 = vpack.c.bf16 %v31_v16, %v30_v15  ;;  %v32_v21 = vld [vmem:[%s439_s1 + $0x40] sm:$0xff]  ;;  %v33_v22 = vld [vmem:[%s439_s1 + $0x48] sm:$0xff]  ;;  %226 = vmatpush3.bf16.msra.mxu1 %v113_v17  ;;  %v114_v23 = vpack.c.bf16 %v101_v19, %v100_v18  ;;  %s272_s11 = smov [#allocation2]  }
   0xb   :  { %227 = vmatprep.subr.bf16.mxu1 %v270_v3  ;;  %v102_v24 = vld [vmem:[%s441_s3 + $0x30] sm:$0xff]  ;;  %v103_v25 = vld [vmem:[%s441_s3 + $0x38] sm:$0xff]  ;;  %v44_v26 = vpack.c.bf16 %v33_v22, %v32_v21  ;;  %v104_v30 = vld [vmem:[%s441_s3 + $0x40] sm:$0xff] }
   0xc   :  { %208 = vmatpush3.bf16.msra.mxu0 %v42_v13  ;;  %v34_v27 = vld [vmem:[%s439_s1 + $0x50] sm:$0xff]  ;;  %v35_v28 = vld [vmem:[%s439_s1 + $0x58] sm:$0xff]  ;;  %v115_v29 = vpack.c.bf16 %v103_v25, %v102_v24  ;;  %v105_v31 = vld [vmem:[%s441_s3 + $0x48] sm:$0xff] }
   0xd   :  { %209 = vmatprep.subr.bf16.mxu0 %v270_v3  ;;  %v45_v32 = vpack.c.bf16 %v35_v28, %v34_v27  ;;  %v36_v33 = vld [vmem:[%s439_s1 + $0x60] sm:$0xff]  ;;  %v37_v34 = vld [vmem:[%s439_s1 + $0x68] sm:$0xff]  ;;  %v116_v35 = vpack.c.bf16 %v105_v31, %v104_v30  ;;  %v106_v36 = vld [vmem:[%s441_s3 + $0x50] sm:$0xff] }
   0xe   :  { %228 = vmatpush3.bf16.msra.mxu1 %v114_v23  ;;  %v107_v37 = vld [vmem:[%s441_s3 + $0x58] sm:$0xff]  ;;  %v46_v38 = vpack.c.bf16 %v37_v34, %v36_v33  ;;  %v38_v39 = vld [vmem:[%s439_s1 + $0x70] sm:$0xff]  ;;  %v22_v43 = vld [vmem:[%s438_s0] sm:$0xff] }
   0xf   :  { %229 = vmatprep.subr.bf16.mxu1 %v270_v3  ;;  %v39_v40 = vld [vmem:[%s439_s1 + $0x78] sm:$0xff]  ;;  %v117_v41 = vpack.c.bf16 %v107_v37, %v106_v36  ;;  %v23_v44 = vpack.c.bf16 %v22_v43, %v22_v43  ;;  %v108_v45 = vld [vmem:[%s441_s3 + $0x60] sm:$0xff]  ;;  %v109_v46 = vld [vmem:[%s441_s3 + $0x68] sm:$0xff] }
  0x10   :  { %210 = vmatpush3.bf16.msra.mxu0 %v43_v20  ;;  %v47_v42 = vpack.c.bf16 %v39_v40, %v38_v39  ;;  %v118_v47 = vpack.c.bf16 %v109_v46, %v108_v45  ;;  %v110_v48 = vld [vmem:[%s441_s3 + $0x70] sm:$0xff]  ;;  %v111_v49 = vld [vmem:[%s441_s3 + $0x78] sm:$0xff]  ;;  %v183_v51 = vld [vmem:[%s440_s2] ss:$0 sm:$0xff]  ;;  %s175_s3 = sshll.u32 %s272_s11, 4  ;;  %s176_s3 = int_to_ptr.vmem [resolvable:$true] %s175_s3 }
  0x11   :  { %211 = vmatprep.subr.bf16.mxu0 %v270_v3  ;;  %v119_v50 = vpack.c.bf16 %v111_v49, %v110_v48  ;;  %v184_v59 = vld [vmem:[%s442_s4] ss:$0 sm:$0xff]  ;;  %s246_s2 = scalar_lea.vmem %s176_s3, 128  ;;  %p251_p1 = scmp.lt.s32.totalorder %s176_s3, %s176_s3 }
  0x12   :  { %230 = vmatpush3.bf16.msra.mxu1 %v115_v29  ;;  %p247_p0 = scmp.ne.s32.totalorder %s176_s3, %s246_s2  ;;  %p252_p2 = scmp.lt.s32.totalorder %s246_s2, %s246_s2 }
  0x13   :  { %231 = vmatprep.subr.bf16.mxu1 %v270_v3 }
  0x14   :  { %212 = vmatpush3.bf16.msra.mxu0 %v44_v26  ;;  %p253_p3 = por %p252_p2, %p251_p1 }
  0x15   :  { %213 = vmatprep.subr.bf16.mxu0 %v270_v3 }
  0x16   :  { %232 = vmatpush3.bf16.msra.mxu1 %v116_v35  ;;  %p254_p4 = pnand %p253_p3, %p247_p0 }
  0x17   :  { %233 = vmatprep.subr.bf16.mxu1 %v270_v3 }
  0x18   :  { %214 = vmatpush3.bf16.msra.mxu0 %v45_v32 }
  0x19   :  { %215 = vmatprep.subr.bf16.mxu0 %v270_v3 }
  0x1a   :  { %234 = vmatpush3.bf16.msra.mxu1 %v117_v41 }
  0x1b   :  { %235 = vmatprep.subr.bf16.mxu1 %v270_v3 }
  0x1c   :  { %216 = vmatpush3.bf16.msra.mxu0 %v46_v38 }
  0x1d   :  { %217 = vmatprep.subr.bf16.mxu0 %v270_v3 }
  0x1e   :  { %236 = vmatpush3.bf16.msra.mxu1 %v118_v47 }
  0x1f   :  { %237 = vmatprep.subr.bf16.mxu1 %v270_v3 }
  0x20   :  { %218 = vmatpush3.bf16.msra.mxu0 %v47_v42 }
  0x22   :  { %238 = vmatpush3.bf16.msra.mxu1 %v119_v50 }
  0x23   :  { %220 = vmatmul.mubr.bf16.vlgmr.msra.gmra.mrb[0].mxu0 %v23_v44 }
  0xf6   :  { %v89_v52 = vpop.f32.mrb[0].mxu0 }
  0xf7   :  { %v90_v53 = vadd.f32 %v183_v51, %v89_v52  ;;  %v221_v54 = vpop.f32.mrb[1].mxu0 }
  0xf8   :  { %v92_v55 = vpop.f32.mrb[2].mxu0 }
  0xf9   :  { %v95_v56 = vmax.f32 %v90_v53, 0.0  ;;  %v222_v57 = vpop.f32.mrb[3].mxu0 }
  0xfb   :  { %v120_v58 = vpack.c.bf16 %v95_v56, %v95_v56 }
  0xfd   :  { %240 = vmatmul.mubr.bf16.vlgmr.msra.gmra.mrb[0].mxu1 %v120_v58 }
 0x1d0   :  { %v162_v60 = vpop.f32.mrb[0].mxu1 }
 0x1d1   :  { %v163_v61 = vadd.f32 %v184_v59, %v162_v60  ;;  %v241_v62 = vpop.f32.mrb[1].mxu1 }
 0x1d2   :  { %v165_v63 = vpop.f32.mrb[2].mxu1 }
 0x1d3   :  { %168 = vst [vmem:[#allocation2] sm:$0xff] %v163_v61  ;;  %v242_v0 = vpop.f32.mrb[3].mxu1 }
 0x1d4   :  { %257 = shalt.err (!%p254_p4)
}
 0x1d5   :  { %s258_s4 = scalar_lea.hbm %s443_s5, 128 }
 0x1d6   :  { %p259_p5 = scmp.ne.s32.totalorder %s443_s5, %s258_s4  ;;  %p262_p6 = scmp.lt.u32.totalorder %s258_s4, %s443_s5 }
 0x1d8   :  { %p264_p7 = pnand %p262_p6, %p259_p5 }
 0x1da   :  { %267 = shalt.err (!%p264_p7)
}
 0x1db   :  { %178 = dma.vmem_to_hbm [thread:$0]  %s176_s3, 128, %s443_s5, [#allocation3]  }
 0x1dc   :  { %268 = dma.done.wait [#allocation3], 128  }
 0x1dd   :  { %269 = vsyncadd [#allocation3], 4294967168 }
 0x1de   :  { %182 = vsyncpa [#allocation3], 1 }

</bundles_post_ra>
